<compile_context>
chip_gen: v7x
topology: tpu7x:2x2x1
jax: 0.10.0
libtpu: 0.0.40
codegen_flags: <defaults>
</compile_context>

<pallas_src>
import functools

import jax
import jax.numpy as jnp
from jax.experimental import pallas as pl
from jax.experimental.pallas import tpu as pltpu


def _round_up(x, m):
    return (x + m - 1) // m * m


def _pick_tile_h(h_out, w_out, k_col, cout_p, w_bytes, budget_bytes):
    """Largest divisor of h_out whose per-step VMEM footprint fits the budget."""
    best = 1
    for th in range(1, h_out + 1):
        if h_out % th:
            continue
        x_blk = 2 * th * _round_up(w_out, 16) * _round_up(k_col, 128) * 2   # bf16 input, double-buffered
        out_blk = 2 * th * _round_up(w_out, 8) * cout_p * 4                 # f32 output, double-buffered
        tmp = 2 * _round_up(th * w_out, 8) * cout_p * 4                     # f32 acc + epilogue temps
        if x_blk + out_blk + tmp + w_bytes <= budget_bytes:
            best = th
    return best


def _conv_bn_act_kernel(x_ref, w_ref, bias_ref, o_ref, *,
                        tile_h, w_out, k_col, cout_p, negative_slope, use_act):
    # x_ref   : (1, tile_h, W_out, KH*KW*Cin)  bf16 im2col block (auto-pipelined)
    # w_ref   : (KH*KW*Cin, Cout_p)            bf16 weights with BN scale folded in (VMEM resident)
    # bias_ref: (1, Cout_p)                    folded conv-bias + BN affine bias (f32)
    # o_ref   : (1, tile_h, W_out, Cout_p)     lane-dense output block
    patch = x_ref[...].reshape(tile_h * w_out, k_col)
    acc = jnp.dot(patch, w_ref[...], preferred_element_type=jnp.float32)   # single MXU dot
    y = acc + bias_ref[...]
    if use_act:
        y = jnp.where(y >= 0.0, y, negative_slope * y)
    o_ref[...] = y.reshape(1, tile_h, w_out, cout_p).astype(o_ref.dtype)


def _conv_bn_act_impl(x_nchw, weight_oihw, conv_bias, gamma, beta,
                      running_mean, running_var, *, padding=1, eps=1e-5,
                      act_type="leaky", negative_slope=0.01):
    """ConvBNAct forward. NCHW in / NCHW out. stride=1, dilation=1, groups=1 only."""
    N, Cin, H, W = x_nchw.shape
    Cout, Cin_w, KH, KW = weight_oihw.shape
    assert Cin_w == Cin, "grouped conv not supported"
    H_out = H + 2 * padding - KH + 1
    W_out = W + 2 * padding - KW + 1
    assert H_out > 0 and W_out > 0
    K_col = KH * KW * Cin
    Cout_p = _round_up(Cout, 128)

    # ---- JAX glue (fused by XLA under the same jit): layout, zero-pad, im2col, BN fold ----
    x_nhwc = jnp.transpose(x_nchw, (0, 2, 3, 1)).astype(jnp.bfloat16)       # NCHW -> NHWC, bf16
    x_pad = jnp.pad(x_nhwc, ((0, 0), (padding, padding), (padding, padding), (0, 0)))
    # im2col: x_col[n, h, w, (kh*KW + kw)*Cin + c] = x_pad[n, h + kh, w + kw, c]
    x_col = jnp.concatenate(
        [x_pad[:, kh:kh + H_out, kw:kw + W_out, :] for kh in range(KH) for kw in range(KW)],
        axis=-1)                                                            # (N, H_out, W_out, K_col)

    scale = gamma / jnp.sqrt(running_var + eps)                             # (Cout,)
    bias = beta + (conv_bias - running_mean) * scale                        # (Cout,)

    # Fold BN scale into the weights (in f32, then cast to bf16 for the MXU).
    w_hwio = jnp.transpose(weight_oihw, (2, 3, 1, 0)).reshape(K_col, Cout)  # (K_col, Cout)
    w_p = jnp.pad(w_hwio * scale[None, :], ((0, 0), (0, Cout_p - Cout))).astype(jnp.bfloat16)
    bias_p = jnp.pad(bias, (0, Cout_p - Cout)).reshape(1, Cout_p).astype(jnp.float32)

    # ---- tile sizing: keep per-step footprint well under v7x's 64 MiB physical VMEM ----
    w_bytes = 2 * _round_up(K_col, 16) * Cout_p * 2 + 2 * Cout_p * 4
    tile_h = _pick_tile_h(H_out, W_out, K_col, Cout_p, w_bytes,
                          budget_bytes=24 * 1024 * 1024)
    grid = (N, H_out // tile_h)

    kernel = functools.partial(
        _conv_bn_act_kernel,
        tile_h=tile_h, w_out=W_out, k_col=K_col, cout_p=Cout_p,
        negative_slope=negative_slope, use_act=(act_type is not None))

    out_padded = pl.pallas_call(
        kernel,
        out_shape=jax.ShapeDtypeStruct((N, H_out, W_out, Cout_p), jnp.float32),
        grid=grid,
        in_specs=[
            pl.BlockSpec((1, tile_h, W_out, K_col), lambda n, i: (n, i, 0, 0)),   # im2col block
            pl.BlockSpec((K_col, Cout_p), lambda n, i: (0, 0)),                   # resident weights
            pl.BlockSpec((1, Cout_p), lambda n, i: (0, 0)),                       # resident bias
        ],
        out_specs=pl.BlockSpec((1, tile_h, W_out, Cout_p), lambda n, i: (n, i, 0, 0)),
        compiler_params=pltpu.CompilerParams(
            dimension_semantics=("parallel", "parallel"),
            vmem_limit_bytes=40 * 1024 * 1024),
    )(x_col, w_p, bias_p)

    out_nhwc = out_padded[..., :Cout]                    # drop lane padding (fused with transpose)
    return jnp.transpose(out_nhwc, (0, 3, 1, 2))         # NHWC -> NCHW


conv_bn_act = jax.jit(
    _conv_bn_act_impl,
    static_argnames=("padding", "eps", "act_type", "negative_slope"))


def _reference(x_nchw, weight_oihw, conv_bias, gamma, beta,
               running_mean, running_var, *, padding=1, eps=1e-5,
               act_type="leaky"):
    """Pure-JAX reference (lax.conv, f32) for a sanity check."""
    y = jax.lax.conv_general_dilated(
        x_nchw, weight_oihw, window_strides=(1, 1),
        padding=[(padding, padding), (padding, padding)],
        dimension_numbers=("NCHW", "OIHW", "NCHW"))
    y = y + conv_bias[None, :, None, None]
    y = (y - running_mean[None, :, None, None]) / jnp.sqrt(
        running_var[None, :, None, None] + eps)
    y = y * gamma[None, :, None, None] + beta[None, :, None, None]
    if act_type is not None:
        y = jnp.where(y >= 0.0, y, 0.01 * y)
    return y


if __name__ == "__main__":
    key = jax.random.PRNGKey(0)
    k_x, k_w, k_b, k_g, k_be, k_m, k_v = jax.random.split(key, 7)

    # ConvBNAct(in_channels=4, out_channels=8, kernel_size=3, padding=1, act_type='leaky')
    N, Cin, H, W = 2, 4, 16, 16
    Cout, KH, KW = 8, 3, 3

    x = jax.random.normal(k_x, (N, Cin, H, W), jnp.float32)
    weight = jax.random.normal(k_w, (Cout, Cin, KH, KW), jnp.float32) * 0.1
    conv_bias = jax.random.normal(k_b, (Cout,), jnp.float32) * 0.1
    gamma = 1.0 + 0.1 * jax.random.normal(k_g, (Cout,), jnp.float32)
    beta = 0.1 * jax.random.normal(k_be, (Cout,), jnp.float32)
    running_mean = 0.1 * jax.random.normal(k_m, (Cout,), jnp.float32)
    running_var = 1.0 + 0.1 * jax.random.uniform(k_v, (Cout,), jnp.float32)

    out = conv_bn_act(x, weight, conv_bias, gamma, beta,
                      running_mean, running_var,
                      padding=1, act_type="leaky")
    out = jax.block_until_ready(out)

    ref = _reference(x, weight, conv_bias, gamma, beta,
                     running_mean, running_var,
                     padding=1, act_type="leaky")
    assert out.shape == (N, Cout, H, W), out.shape
    max_err = float(jnp.max(jnp.abs(out - ref)))
    # bf16 MXU operands (inputs + BN-folded weights) with f32 accumulation.
    assert jnp.allclose(out, ref, atol=3e-2, rtol=3e-2), max_err

    print("KERNEL_OK")
</pallas_src>

<mosaic_0001>
module attributes {stable_mosaic.version = 11 : i64} {
  func.func @_conv_bn_act_kernel(%arg0: i32, %arg1: i32, %arg2: memref<1x16x16x36xbf16, #tpu.memory_space<vmem>>, %arg3: memref<36x128xbf16, #tpu.memory_space<vmem>>, %arg4: memref<1x128xf32, #tpu.memory_space<vmem>>, %arg5: memref<1x16x16x128xf32, #tpu.memory_space<vmem>>) attributes {dimension_semantics = [#tpu.dimension_semantics<parallel>, #tpu.dimension_semantics<parallel>], iteration_bounds = array<i64: 2, 1>, scalar_prefetch = 0 : i64, scratch_operands = 0 : i64, tpu.core_type = #tpu.core_type<tc>, window_params = [{transform_indices = @transform_0, window_bounds = array<i64: 1, 16, 16, 36>}, {pipeline_mode = #tpu.pipeline_mode<synchronous>, transform_indices = @transform_1, window_bounds = array<i64: 36, 128>}, {pipeline_mode = #tpu.pipeline_mode<synchronous>, transform_indices = @transform_2, window_bounds = array<i64: 1, 128>}, {transform_indices = @transform_3, window_bounds = array<i64: 1, 16, 16, 128>}]} {
    %c0 = arith.constant 0 : index
    %c0_0 = arith.constant 0 : index
    %c0_1 = arith.constant 0 : index
    %c0_2 = arith.constant 0 : index
    %0 = vector.load %arg2[%c0, %c0_0, %c0_1, %c0_2] : memref<1x16x16x36xbf16, #tpu.memory_space<vmem>>, vector<1x16x16x36xbf16>
    %1 = vector.shape_cast %0 : vector<1x16x16x36xbf16> to vector<256x36xbf16>
    %c0_3 = arith.constant 0 : index
    %c0_4 = arith.constant 0 : index
    %2 = vector.load %arg3[%c0_3, %c0_4] : memref<36x128xbf16, #tpu.memory_space<vmem>>, vector<36x128xbf16>
    %cst = arith.constant dense<0.000000e+00> : vector<256x128xf32>
    %3 = tpu.matmul %1, %2, %cst {dimension_numbers = #tpu.dot_dimension_numbers<[1], [0], [0], [1], [0, 0, 1, 1], [], []>} : vector<256x36xbf16>, vector<36x128xbf16>, vector<256x128xf32> -> vector<256x128xf32>
    %c0_5 = arith.constant 0 : index
    %c0_6 = arith.constant 0 : index
    %4 = vector.load %arg4[%c0_5, %c0_6] : memref<1x128xf32, #tpu.memory_space<vmem>>, vector<1x128xf32>
    %5 = vector.broadcast %4 : vector<1x128xf32> to vector<256x128xf32>
    %6 = arith.addf %3, %5 : vector<256x128xf32>
    %cst_7 = arith.constant 0.000000e+00 : f32
    %7 = vector.broadcast %cst_7 : f32 to vector<256x128xf32>
    %8 = arith.cmpf oge, %6, %7 : vector<256x128xf32>
    %cst_8 = arith.constant 0.00999999977 : f32
    %9 = vector.broadcast %cst_8 : f32 to vector<256x128xf32>
    %10 = arith.mulf %9, %6 : vector<256x128xf32>
    %11 = arith.select %8, %6, %10 : vector<256x128xi1>, vector<256x128xf32>
    %12 = vector.shape_cast %11 : vector<256x128xf32> to vector<1x16x16x128xf32>
    %c0_9 = arith.constant 0 : index
    %c0_10 = arith.constant 0 : index
    %c0_11 = arith.constant 0 : index
    %c0_12 = arith.constant 0 : index
    %13 = vector.load %arg5[%c0_9, %c0_10, %c0_11, %c0_12] : memref<1x16x16x128xf32, #tpu.memory_space<vmem>>, vector<1x16x16x128xf32>
    tpu.vector_store %arg5[%c0_9, %c0_10, %c0_11, %c0_12], %12 {strides = array<i32>} : memref<1x16x16x128xf32, #tpu.memory_space<vmem>>, vector<1x16x16x128xf32>,
    return
  }
  func.func @transform_0(%arg0: i32, %arg1: i32) -> (i32, i32, i32, i32) {
    %c0_i32 = arith.constant 0 : i32
    %c0_i32_0 = arith.constant 0 : i32
    %c0_i32_1 = arith.constant 0 : i32
    return %arg0, %arg1, %c0_i32, %c0_i32_0 : i32, i32, i32, i32
  }
  func.func @transform_1(%arg0: i32, %arg1: i32) -> (i32, i32) {
    %c0_i32 = arith.constant 0 : i32
    %c0_i32_0 = arith.constant 0 : i32
    %c0_i32_1 = arith.constant 0 : i32
    return %c0_i32, %c0_i32_0 : i32, i32
  }
  func.func @transform_2(%arg0: i32, %arg1: i32) -> (i32, i32) {
    %c0_i32 = arith.constant 0 : i32
    %c0_i32_0 = arith.constant 0 : i32
    %c0_i32_1 = arith.constant 0 : i32
    return %c0_i32, %c0_i32_0 : i32, i32
  }
  func.func @transform_3(%arg0: i32, %arg1: i32) -> (i32, i32, i32, i32) {
    %c0_i32 = arith.constant 0 : i32
    %c0_i32_0 = arith.constant 0 : i32
    %c0_i32_1 = arith.constant 0 : i32
    return %arg0, %arg1, %c0_i32, %c0_i32_0 : i32, i32, i32, i32
  }
}

</mosaic_0001>

<bundles_post_ra>
// kernel: _conv_bn_act_impl.1
= control target key start
LH: loop header
LB: loop body
LE: loop exit
PB: predicated region body
PF: predicated region fallthrough
CT: control target
= control target key end

     0   :  { %s994_s12 = smov 0   ;;  %s996_s13 = smov 0   ;;  %s1145_s0 = inlined_call_operand.vmem [shape: bf16[2,16,16,36], index: 0, kind: input, shape index: {}]   ;;  %s1146_s1 = inlined_call_operand.vmem [shape: bf16[36,128], index: 1, kind: input, shape index: {}]   ;;  %s1147_s2 = inlined_call_operand.vmem [shape: f32[1,128], index: 2, kind: input, shape index: {}]   ;;  %s1148_s3 = inlined_call_operand.vmem [shape: f32[2,16,16,128], index: 3, kind: output, shape index: {}]  }
   0x1   :  { %s998_s14 = smov 0  }
   0x2 LB: > { %s25_s15 = sadd.s32 1, %s968_s13  ;;  %p797_p0 = scmp.ge.s32.totalorder %s972_s14, 1  ;;  %s972_s14 = sphi %s998_s14, %s13_s14   ;;  %s968_s13 = sphi %s996_s13, %s1150_s13   ;;  %s964_s12 = sphi %s994_s12, %s1149_s12  }
   0x3   : > { %p27_p1 = scmp.ge.s32.totalorder %s25_s15, 2  ;;  %p159_p2 = scmp.lt.s32.totalorder %s972_s14, 3 }
   0x5   : > { %s1152_s15 = smov (%p27_p1, %s25_s15), 0  ;;  %p160_p3 = pnand %p797_p0, %p159_p2 }
   0x6   : > { %v931_v0 = vld [vmem:[%s1146_s1] sm:$0xff] (!%p160_p3)   ;;  %v932_v1 = vld [vmem:[%s1146_s1 + $0x8] sm:$0xff] (!%p160_p3)   ;;  %p194_p4 = scmp.lt.s32.totalorder (!%p160_p3), %s964_s12, 1  ;;  %v933_v2 = vld [vmem:[%s1146_s1 + $0x10] ss:$0 sps:$4 sm:$0x33] (!%p160_p3)  }
   0x7   : > { %163 = sbr.rel (%p160_p3) target bundleno = 269 (0x10d), region = 32  ;;  %861 = vmatprep.subr.bf16.mxu0 (!%p160_p3), %v931_v0  ;;  %899 = vmatprep.subr.bf16.mxu1 (!%p160_p3), %v931_v0  ;;  %vm404_vm0 = vcmask (!%p160_p3), 1041408   ;;  %vm355_vm1 = vcmask (!%p160_p3), 293888   ;;  %v1064_v20 = vld [vmem:[%s1147_s2] ss:$0 sm:$0xff] (!%p160_p3) }
   0x8   : > { %862 = vmatpush3.bf16.msra.mxu0 (!%p160_p3), %v931_v0  ;;  %902 = vmatpush3.bf16.msra.mxu1 (!%p160_p3), %v931_v0  ;;  %v406_v4 = vsel (!%p160_p3), %vm404_vm0, %v933_v2, 0 }
   0x9   : > { %863 = vmatprep.subr.bf16.mxu0 (!%p160_p3), %v932_v1  ;;  %900 = vmatprep.subr.bf16.mxu1 (!%p160_p3), %v932_v1 }
   0xc   : > { %864 = vmatpush3.bf16.msra.mxu0 (!%p160_p3), %v932_v1  ;;  %903 = vmatpush3.bf16.msra.mxu1 (!%p160_p3), %v932_v1 }
   0xd   : > { %905 = vmatprep.subr.msk.bf16.mxu0 (!%p160_p3), %vm404_vm0, %v933_v2  ;;  %906 = vmatprep.subr.msk.bf16.mxu1 (!%p160_p3), %vm404_vm0, %v933_v2 }
   0xe   : > { %s1154_s12 = smov (!%p194_p4, %s964_s12), 1 }
   0xf   : > { %s840_s22 = sshll.u32 %s1154_s12, 7  ;;  %s841_s28 = sshll.u32 %s1154_s12, 8 }
  0x10   : > { %s1027_s25 = scalar_lea.vmem %s1145_s0, %s840_s22  ;;  %866 = vmatpush3.bf16.msra.mxu0 %v406_v4  ;;  %904 = vmatpush3.bf16.msra.mxu1 %v406_v4  ;;  %s1074_s4 = scalar_lea.vmem %s1148_s3, %s841_s28 }
  0x11   : > { %v934_v3 = vld [vmem:[%s1027_s25] sm:$0xff]   ;;  %v936_v6 = vld [vmem:[%s1027_s25 + $0x8] sm:$0xff]   ;;  %v938_v8 = vld [vmem:[%s1027_s25 + $0x10] sm:$0xff]  }
  0x12   : > { %v935_v5 = vld [vmem:[%s1027_s25 + $0x40] sm:$0xff]   ;;  %867 = vmatprep.mubr.msk.bf16.mxu0 %vm355_vm1, %v934_v3  ;;  %v937_v7 = vld [vmem:[%s1027_s25 + $0x48] sm:$0xff]   ;;  %v939_v9 = vld [vmem:[%s1027_s25 + $0x50] sm:$0xff]  }
  0x13   : > { %883 = vmatprep.mubr.msk.bf16.mxu1 %vm355_vm1, %v935_v5  ;;  %868 = vmatmul.mubr.msk.bf16.vlgmr.msra.gmra.mrb[0].mxu0 %vm355_vm1, %v936_v6  ;;  %v940_v10 = vld [vmem:[%s1027_s25 + $0x18] sm:$0xff]   ;;  %v942_v12 = vld [vmem:[%s1027_s25 + $0x20] sm:$0xff]   ;;  %v944_v14 = vld [vmem:[%s1027_s25 + $0x28] sm:$0xff]  }
  0x14   : > { %884 = vmatmul.mubr.msk.bf16.vlgmr.msra.gmra.mrb[0].mxu1 %vm355_vm1, %v937_v7  ;;  %871 = vmatprep.mubr.msk.bf16.mxu0 %vm355_vm1, %v938_v8  ;;  %v941_v11 = vld [vmem:[%s1027_s25 + $0x58] sm:$0xff]   ;;  %v943_v13 = vld [vmem:[%s1027_s25 + $0x60] sm:$0xff]   ;;  %v945_v15 = vld [vmem:[%s1027_s25 + $0x68] sm:$0xff]  }
  0x15   : > { %887 = vmatprep.mubr.msk.bf16.mxu1 %vm355_vm1, %v939_v9  ;;  %v946_v16 = vld [vmem:[%s1027_s25 + $0x30] sm:$0xff]   ;;  %v948_v18 = vld [vmem:[%s1027_s25 + $0x38] sm:$0xff]  }
  0x16   : > { %v947_v17 = vld [vmem:[%s1027_s25 + $0x70] sm:$0xff]   ;;  %v949_v19 = vld [vmem:[%s1027_s25 + $0x78] sm:$0xff]  }
  0x1b   : > { %872 = vmatmul.mubr.msk.bf16.gmra.mrb[4].mxu0 %vm355_vm1, %v940_v10 }
  0x1c   : > { %888 = vmatmul.mubr.msk.bf16.gmra.mrb[4].mxu1 %vm355_vm1, %v941_v11  ;;  %875 = vmatprep.mubr.msk.bf16.mxu0 %vm355_vm1, %v942_v12 }
  0x1d   : > { %891 = vmatprep.mubr.msk.bf16.mxu1 %vm355_vm1, %v943_v13 }
  0x23   : > { %876 = vmatmul.mubr.msk.bf16.gmra.mrb[8].mxu0 %vm355_vm1, %v944_v14 }
  0x24   : > { %892 = vmatmul.mubr.msk.bf16.gmra.mrb[8].mxu1 %vm355_vm1, %v945_v15  ;;  %879 = vmatprep.mubr.msk.bf16.mxu0 %vm355_vm1, %v946_v16 }
  0x25   : > { %895 = vmatprep.mubr.msk.bf16.mxu1 %vm355_vm1, %v947_v17 }
  0x2b   : > { %880 = vmatmul.mubr.msk.bf16.gmra.mrb[12].mxu0 %vm355_vm1, %v948_v18 }
  0x2c   : > { %896 = vmatmul.mubr.msk.bf16.gmra.mrb[12].mxu1 %vm355_vm1, %v949_v19 }
  0xe6   : > { %v869_v21 = vpop.f32.mrb[0].mxu0 }
  0xe7   : > { %v885_v22 = vpop.f32.mrb[0].mxu1  ;;  %v451_v23 = vadd.f32 %v869_v21, %v1064_v20  ;;  %v442_v25 = vpop.f32.mrb[1].mxu0 }
  0xe8   : > { %v515_v24 = vadd.f32 %v885_v22, %v1064_v20  ;;  %v506_v26 = vpop.f32.mrb[1].mxu1  ;;  %v443_v27 = vadd.f32 %v1064_v20, %v442_v25  ;;  %v870_v29 = vpop.f32.mrb[2].mxu0 }
  0xe9   : > { %v507_v28 = vadd.f32 %v1064_v20, %v506_v26  ;;  %v886_v30 = vpop.f32.mrb[2].mxu1  ;;  %vm571_vm2 = vcmp.ge.f32.partialorder %v451_v23, 0.0  ;;  %v603_v31 = vmul.f32 0.01, %v451_v23  ;;  %v454_v37 = vadd.f32 %v870_v29, %v1064_v20  ;;  %v445_v39 = vpop.f32.mrb[3].mxu0 }
  0xea   : > { %vm587_vm3 = vcmp.ge.f32.partialorder %v515_v24, 0.0  ;;  %v619_v32 = vmul.f32 0.01, %v515_v24  ;;  %vm569_vm4 = vcmp.ge.f32.partialorder %v443_v27, 0.0  ;;  %v601_v33 = vmul.f32 0.01, %v443_v27 }
  0xeb   : > { %vm585_vm5 = vcmp.ge.f32.partialorder %v507_v28, 0.0  ;;  %v617_v34 = vmul.f32 0.01, %v507_v28  ;;  %v635_v35 = vsel %vm571_vm2, %v451_v23, %v603_v31  ;;  %v518_v38 = vadd.f32 %v886_v30, %v1064_v20  ;;  %v509_v40 = vpop.f32.mrb[3].mxu1 }
  0xec   : > { %v651_v36 = vsel %vm587_vm3, %v515_v24, %v619_v32  ;;  %667 = vst [vmem:[%s1074_s4 + $0x10] sm:$0xff] %v635_v35  ;;  %v633_v41 = vsel %vm569_vm4, %v443_v27, %v601_v33  ;;  %v446_v43 = vadd.f32 %v1064_v20, %v445_v39  ;;  %v510_v44 = vadd.f32 %v1064_v20, %v509_v40 }
  0xed   : > { %683 = vst [vmem:[%s1074_s4 + $0x90] sm:$0xff] %v651_v36  ;;  %v649_v42 = vsel %vm585_vm5, %v507_v28, %v617_v34  ;;  %665 = vst [vmem:[%s1074_s4] sm:$0xff] %v633_v41  ;;  %vm572_vm6 = vcmp.ge.f32.partialorder %v454_v37, 0.0  ;;  %v604_v45 = vmul.f32 0.01, %v454_v37  ;;  %vm588_vm7 = vcmp.ge.f32.partialorder %v518_v38, 0.0 }
  0xee   : > { %681 = vst [vmem:[%s1074_s4 + $0x80] sm:$0xff] %v649_v42  ;;  %v620_v46 = vmul.f32 0.01, %v518_v38  ;;  %vm570_vm8 = vcmp.ge.f32.partialorder %v446_v43, 0.0  ;;  %v602_v47 = vmul.f32 0.01, %v446_v43 }
  0xef   : > { %vm586_vm9 = vcmp.ge.f32.partialorder %v510_v44, 0.0  ;;  %v618_v48 = vmul.f32 0.01, %v510_v44  ;;  %v636_v49 = vsel %vm572_vm6, %v454_v37, %v604_v45  ;;  %v873_v51 = vpop.f32.mrb[4].mxu0  ;;  %v889_v52 = vpop.f32.mrb[4].mxu1 }
  0xf0   : > { %v652_v50 = vsel %vm588_vm7, %v518_v38, %v620_v46  ;;  %668 = vst [vmem:[%s1074_s4 + $0x18] sm:$0xff] %v636_v49  ;;  %v634_v53 = vsel %vm570_vm8, %v446_v43, %v602_v47  ;;  %v467_v55 = vadd.f32 %v873_v51, %v1064_v20  ;;  %v531_v56 = vadd.f32 %v889_v52, %v1064_v20  ;;  %v458_v57 = vpop.f32.mrb[5].mxu0  ;;  %v522_v58 = vpop.f32.mrb[5].mxu1 }
  0xf1   : > { %684 = vst [vmem:[%s1074_s4 + $0x98] sm:$0xff] %v652_v50  ;;  %v650_v54 = vsel %vm586_vm9, %v510_v44, %v618_v48  ;;  %666 = vst [vmem:[%s1074_s4 + $0x8] sm:$0xff] %v634_v53  ;;  %v459_v59 = vadd.f32 %v1064_v20, %v458_v57  ;;  %v523_v60 = vadd.f32 %v1064_v20, %v522_v58  ;;  %v874_v61 = vpop.f32.mrb[6].mxu0  ;;  %v890_v62 = vpop.f32.mrb[6].mxu1 }
  0xf2   : > { %682 = vst [vmem:[%s1074_s4 + $0x88] sm:$0xff] %v650_v54  ;;  %vm575_vm10 = vcmp.ge.f32.partialorder %v467_v55, 0.0  ;;  %v607_v63 = vmul.f32 0.01, %v467_v55  ;;  %vm591_vm11 = vcmp.ge.f32.partialorder %v531_v56, 0.0  ;;  %v470_v5 = vadd.f32 %v874_v61, %v1064_v20  ;;  %v461_v7 = vpop.f32.mrb[7].mxu0 }
  0xf3   : > { %v623_v0 = vmul.f32 0.01, %v531_v56  ;;  %vm573_vm12 = vcmp.ge.f32.partialorder %v459_v59, 0.0  ;;  %v605_v1 = vmul.f32 0.01, %v459_v59  ;;  %vm589_vm13 = vcmp.ge.f32.partialorder %v523_v60, 0.0 }
  0xf4   : > { %v621_v2 = vmul.f32 0.01, %v523_v60  ;;  %v639_v3 = vsel %vm575_vm10, %v467_v55, %v607_v63  ;;  %v534_v6 = vadd.f32 %v890_v62, %v1064_v20  ;;  %v525_v8 = vpop.f32.mrb[7].mxu1  ;;  %v462_v11 = vadd.f32 %v1064_v20, %v461_v7 }
  0xf5   : > { %v655_v4 = vsel %vm591_vm11, %v531_v56, %v623_v0  ;;  %671 = vst [vmem:[%s1074_s4 + $0x30] sm:$0xff] %v639_v3  ;;  %v637_v9 = vsel %vm573_vm12, %v459_v59, %v605_v1  ;;  %v526_v12 = vadd.f32 %v1064_v20, %v525_v8  ;;  %vm576_vm14 = vcmp.ge.f32.partialorder %v470_v5, 0.0 }
  0xf6   : > { %687 = vst [vmem:[%s1074_s4 + $0xb0] sm:$0xff] %v655_v4  ;;  %v653_v10 = vsel %vm589_vm13, %v523_v60, %v621_v2  ;;  %669 = vst [vmem:[%s1074_s4 + $0x20] sm:$0xff] %v637_v9  ;;  %v608_v13 = vmul.f32 0.01, %v470_v5  ;;  %vm592_vm15 = vcmp.ge.f32.partialorder %v534_v6, 0.0  ;;  %vm574_vm0 = vcmp.ge.f32.partialorder %v462_v11, 0.0 }
  0xf7   : > { %685 = vst [vmem:[%s1074_s4 + $0xa0] sm:$0xff] %v653_v10  ;;  %v624_v14 = vmul.f32 0.01, %v534_v6  ;;  %v606_v15 = vmul.f32 0.01, %v462_v11  ;;  %vm590_vm1 = vcmp.ge.f32.partialorder %v526_v12, 0.0 }
  0xf8   : > { %v622_v16 = vmul.f32 0.01, %v526_v12  ;;  %v640_v17 = vsel %vm576_vm14, %v470_v5, %v608_v13  ;;  %v877_v19 = vpop.f32.mrb[8].mxu0  ;;  %v893_v21 = vpop.f32.mrb[8].mxu1 }
  0xf9   : > { %v656_v18 = vsel %vm592_vm15, %v534_v6, %v624_v14  ;;  %672 = vst [vmem:[%s1074_s4 + $0x38] sm:$0xff] %v640_v17  ;;  %v638_v22 = vsel %vm574_vm0, %v462_v11, %v606_v15  ;;  %v483_v24 = vadd.f32 %v877_v19, %v1064_v20  ;;  %v547_v25 = vadd.f32 %v893_v21, %v1064_v20  ;;  %v474_v26 = vpop.f32.mrb[9].mxu0  ;;  %v538_v27 = vpop.f32.mrb[9].mxu1 }
  0xfa   : > { %688 = vst [vmem:[%s1074_s4 + $0xb8] sm:$0xff] %v656_v18  ;;  %v654_v23 = vsel %vm590_vm1, %v526_v12, %v622_v16  ;;  %670 = vst [vmem:[%s1074_s4 + $0x28] sm:$0xff] %v638_v22  ;;  %v475_v28 = vadd.f32 %v1064_v20, %v474_v26  ;;  %v539_v29 = vadd.f32 %v1064_v20, %v538_v27  ;;  %v878_v30 = vpop.f32.mrb[10].mxu0  ;;  %v894_v31 = vpop.f32.mrb[10].mxu1 }
  0xfb   : > { %686 = vst [vmem:[%s1074_s4 + $0xa8] sm:$0xff] %v654_v23  ;;  %vm579_vm2 = vcmp.ge.f32.partialorder %v483_v24, 0.0  ;;  %v611_v32 = vmul.f32 0.01, %v483_v24  ;;  %vm595_vm3 = vcmp.ge.f32.partialorder %v547_v25, 0.0  ;;  %v486_v38 = vadd.f32 %v878_v30, %v1064_v20  ;;  %v477_v40 = vpop.f32.mrb[11].mxu0 }
  0xfc   : > { %v627_v33 = vmul.f32 0.01, %v547_v25  ;;  %vm577_vm4 = vcmp.ge.f32.partialorder %v475_v28, 0.0  ;;  %v609_v34 = vmul.f32 0.01, %v475_v28  ;;  %vm593_vm5 = vcmp.ge.f32.partialorder %v539_v29, 0.0 }
  0xfd   : > { %v625_v35 = vmul.f32 0.01, %v539_v29  ;;  %v643_v36 = vsel %vm579_vm2, %v483_v24, %v611_v32  ;;  %v550_v39 = vadd.f32 %v894_v31, %v1064_v20  ;;  %v541_v41 = vpop.f32.mrb[11].mxu1  ;;  %v478_v44 = vadd.f32 %v1064_v20, %v477_v40 }
  0xfe   : > { %v659_v37 = vsel %vm595_vm3, %v547_v25, %v627_v33  ;;  %675 = vst [vmem:[%s1074_s4 + $0x50] sm:$0xff] %v643_v36  ;;  %v641_v42 = vsel %vm577_vm4, %v475_v28, %v609_v34  ;;  %v542_v45 = vadd.f32 %v1064_v20, %v541_v41  ;;  %v881_v46 = vpop.f32.mrb[12].mxu0  ;;  %vm580_vm6 = vcmp.ge.f32.partialorder %v486_v38, 0.0 }
  0xff   : > { %691 = vst [vmem:[%s1074_s4 + $0xd0] sm:$0xff] %v659_v37  ;;  %v657_v43 = vsel %vm593_vm5, %v539_v29, %v625_v35  ;;  %v897_v47 = vpop.f32.mrb[12].mxu1  ;;  %673 = vst [vmem:[%s1074_s4 + $0x40] sm:$0xff] %v641_v42  ;;  %v612_v48 = vmul.f32 0.01, %v486_v38  ;;  %vm596_vm7 = vcmp.ge.f32.partialorder %v550_v39, 0.0  ;;  %v499_v54 = vadd.f32 %v881_v46, %v1064_v20 }
 0x100   : > { %689 = vst [vmem:[%s1074_s4 + $0xc0] sm:$0xff] %v657_v43  ;;  %v628_v49 = vmul.f32 0.01, %v550_v39  ;;  %vm578_vm8 = vcmp.ge.f32.partialorder %v478_v44, 0.0  ;;  %v610_v50 = vmul.f32 0.01, %v478_v44  ;;  %v563_v55 = vadd.f32 %v897_v47, %v1064_v20 }
 0x101   : > { %vm594_vm9 = vcmp.ge.f32.partialorder %v542_v45, 0.0  ;;  %v626_v51 = vmul.f32 0.01, %v542_v45  ;;  %v644_v52 = vsel %vm580_vm6, %v486_v38, %v612_v48  ;;  %v490_v56 = vpop.f32.mrb[13].mxu0  ;;  %v554_v57 = vpop.f32.mrb[13].mxu1  ;;  %vm583_vm10 = vcmp.ge.f32.partialorder %v499_v54, 0.0 }
 0x102   : > { %v660_v53 = vsel %vm596_vm7, %v550_v39, %v628_v49  ;;  %676 = vst [vmem:[%s1074_s4 + $0x58] sm:$0xff] %v644_v52  ;;  %v642_v58 = vsel %vm578_vm8, %v478_v44, %v610_v50  ;;  %v491_v60 = vadd.f32 %v1064_v20, %v490_v56  ;;  %v555_v61 = vadd.f32 %v1064_v20, %v554_v57  ;;  %v882_v62 = vpop.f32.mrb[14].mxu0  ;;  %v898_v63 = vpop.f32.mrb[14].mxu1 }
 0x103   : > { %692 = vst [vmem:[%s1074_s4 + $0xd8] sm:$0xff] %v660_v53  ;;  %v658_v59 = vsel %vm594_vm9, %v542_v45, %v626_v51  ;;  %674 = vst [vmem:[%s1074_s4 + $0x48] sm:$0xff] %v642_v58  ;;  %v615_v0 = vmul.f32 0.01, %v499_v54  ;;  %vm599_vm11 = vcmp.ge.f32.partialorder %v563_v55, 0.0  ;;  %v502_v6 = vadd.f32 %v882_v62, %v1064_v20  ;;  %v493_v8 = vpop.f32.mrb[15].mxu0 }
 0x104   : > { %690 = vst [vmem:[%s1074_s4 + $0xc8] sm:$0xff] %v658_v59  ;;  %v631_v1 = vmul.f32 0.01, %v563_v55  ;;  %vm581_vm12 = vcmp.ge.f32.partialorder %v491_v60, 0.0  ;;  %v613_v2 = vmul.f32 0.01, %v491_v60  ;;  %v566_v7 = vadd.f32 %v898_v63, %v1064_v20 }
 0x105   : > { %vm597_vm13 = vcmp.ge.f32.partialorder %v555_v61, 0.0  ;;  %v629_v3 = vmul.f32 0.01, %v555_v61  ;;  %v647_v4 = vsel %vm583_vm10, %v499_v54, %v615_v0  ;;  %v557_v9 = vpop.f32.mrb[15].mxu1  ;;  %v494_v12 = vadd.f32 %v1064_v20, %v493_v8 }
 0x106   : > { %v663_v5 = vsel %vm599_vm11, %v563_v55, %v631_v1  ;;  %679 = vst [vmem:[%s1074_s4 + $0x70] sm:$0xff] %v647_v4  ;;  %v645_v10 = vsel %vm581_vm12, %v491_v60, %v613_v2  ;;  %v558_v13 = vadd.f32 %v1064_v20, %v557_v9  ;;  %vm584_vm14 = vcmp.ge.f32.partialorder %v502_v6, 0.0 }
 0x107   : > { %695 = vst [vmem:[%s1074_s4 + $0xf0] sm:$0xff] %v663_v5  ;;  %v661_v11 = vsel %vm597_vm13, %v555_v61, %v629_v3  ;;  %677 = vst [vmem:[%s1074_s4 + $0x60] sm:$0xff] %v645_v10  ;;  %v616_v14 = vmul.f32 0.01, %v502_v6  ;;  %vm600_vm15 = vcmp.ge.f32.partialorder %v566_v7, 0.0  ;;  %vm582_vm0 = vcmp.ge.f32.partialorder %v494_v12, 0.0 }
 0x108   : > { %693 = vst [vmem:[%s1074_s4 + $0xe0] sm:$0xff] %v661_v11  ;;  %v632_v15 = vmul.f32 0.01, %v566_v7  ;;  %v614_v16 = vmul.f32 0.01, %v494_v12  ;;  %vm598_vm1 = vcmp.ge.f32.partialorder %v558_v13, 0.0 }
 0x109   : > { %v630_v17 = vmul.f32 0.01, %v558_v13  ;;  %v648_v18 = vsel %vm584_vm14, %v502_v6, %v616_v14 }
 0x10a   : > { %v664_v19 = vsel %vm600_vm15, %v566_v7, %v632_v15  ;;  %680 = vst [vmem:[%s1074_s4 + $0x78] sm:$0xff] %v648_v18  ;;  %v646_v21 = vsel %vm582_vm0, %v494_v12, %v614_v16 }
 0x10b   : > { %696 = vst [vmem:[%s1074_s4 + $0xf8] sm:$0xff] %v664_v19  ;;  %v662_v22 = vsel %vm598_vm1, %v558_v13, %v630_v17  ;;  %678 = vst [vmem:[%s1074_s4 + $0x68] sm:$0xff] %v646_v21 }
 0x10c   : > { %694 = vst [vmem:[%s1074_s4 + $0xe8] sm:$0xff] %v662_v22 }
 0x10d PF: > { %s13_s14 = sadd.s32 1, %s972_s14   ;;  %s1149_s12 = smov %s968_s13 }
 0x10e   : > { %p10_p5 = scmp.ge.s32.totalorder %s13_s14, 4   ;;  %s1150_s13 = smov %s1152_s15 }
 0x110   :  { %12 = sbr.rel (!%p10_p5) target bundleno = 2 (0x2), region = 62 }

</bundles_post_ra>
